<compile_context>
chip_gen: v7x
topology: tpu7x:2x2x1
jax: 0.10.0
libtpu: 0.0.40
codegen_flags: <defaults>
</compile_context>

<pallas_src>
import functools

import numpy as np
import jax
import jax.numpy as jnp
from jax.experimental import pallas as pl
from jax.experimental.pallas import tpu as pltpu


# ----------------------------------------------------------------------------
# In-kernel math
# ----------------------------------------------------------------------------
def _bspline1d(x, exact_torch_knots):
    """Cubic B-spline basis matching BsplineBasis.forward.

    Closed form (all VALU: abs/max/mul/sub):
        B(x) = (relu(2-|x|)^3 - 4*relu(1-|x|)^3) / 6
    With exact_torch_knots=True it also reproduces the PyTorch module's
    Heaviside endpoint conventions, which deviate from the closed form at
    exactly two points:
        x == 0  : B1 and B2 both fire -> 4/3 instead of 2/3   (add +2/3)
        x == -1 : both adjacent pieces are masked to 0         (add -1/6)
    """
    ax = jnp.abs(x)
    t2 = jnp.maximum(2.0 - ax, 0.0)
    t1 = jnp.maximum(1.0 - ax, 0.0)
    b = (t2 * t2 * t2 - 4.0 * (t1 * t1 * t1)) * (1.0 / 6.0)
    if exact_torch_knots:
        b = b + jnp.where(x == 0.0, 2.0 / 3.0,
                          jnp.where(x == -1.0, -1.0 / 6.0, 0.0))
    return b


# ----------------------------------------------------------------------------
# Pallas kernel
# ----------------------------------------------------------------------------
def _bspline2d_kernel(params_ref, xt_ref, sx_ref, sy_ref, w_ref, o_ref,
                      *, exact_torch_knots):
    # params_ref (SMEM, (4,)): [origin_x, origin_y, spacing_x, spacing_y]
    ox, oy = params_ref[0], params_ref[1]
    sx, sy = params_ref[2], params_ref[3]

    # True divide (not reciprocal-multiply): keeps knot-exact coordinates
    # bit-exact vs. the PyTorch forward for any spacing; the per-point divides
    # land on the otherwise-idle EUP slot.
    cx = (xt_ref[0:1, :] - ox) / sx                          # (1, TN)
    cy = (xt_ref[1:2, :] - oy) / sy                          # (1, TN)

    bx = _bspline1d(cx - sx_ref[...], exact_torch_knots)     # (Kx, TN)
    by = _bspline1d(cy - sy_ref[...], exact_torch_knots)     # (Ky, TN)
    kx = bx.shape[0]

    # Bilinear form over the separable node grid:
    #   u[n] = sum_{i,j} Wu[i,j] * bx[i,n] * by[j,n]
    # Fold the Ky contraction into one MXU matmul, then per-lane multiply and
    # an XLU sublane reduce over Kx (both in slack slots while VALU is hot).
    t = jnp.dot(w_ref[...], by, preferred_element_type=jnp.float32)  # (2Kx,TN)
    u = jnp.sum(bx * t[0:kx, :], axis=0, keepdims=True)              # (1, TN)
    v = jnp.sum(bx * t[kx:2 * kx, :], axis=0, keepdims=True)         # (1, TN)
    o_ref[...] = jnp.concatenate([u, v], axis=0)                     # (2, TN)


def bspline2d_pallas(x, origin, spacing, shift_x, shift_y, weight_u, weight_v,
                     nodes_shape, *, tile_n=4096, exact_torch_knots=True):
    """Forward pass of Bspline2D.

    x: (N, 2) query points. origin/spacing: (1, 2).
    shift_x/shift_y/weight_u/weight_v: (1, K), K = Kx*Ky, laid out exactly like
    the module's np.mgrid buffers (row-major over the (Kx, Ky) node grid).
    Returns (N, 2) = cat(u, v), same as Bspline2D.forward.
    """
    N = x.shape[0]
    Kx, Ky = int(nodes_shape[0]), int(nodes_shape[1])

    # --- tile size: big enough to amortize the ~0.35us per-grid-step overhead,
    # never larger than the (128-padded) problem, and capped so the grid keeps
    # >= 2 steps when N allows it (so both v7x TensorCores get work).
    tile_cap = ((N + 127) // 128) * 128
    if N > 128:
        tile_cap = min(tile_cap, ((pl.cdiv(N, 2) + 127) // 128) * 128)
    tile_n = min(max(128, (int(tile_n) // 128) * 128), tile_cap)
    n_tiles = pl.cdiv(N, tile_n)

    # Points on the lane axis; no jnp.pad — Pallas handles the ragged last
    # block (dead-lane garbage never crosses lanes; its stores are masked).
    xt = x.astype(jnp.float32).T                              # (2, N)

    # 4 scalars in SMEM: origin and spacing.
    params = jnp.concatenate(
        [origin.reshape(-1), spacing.reshape(-1)]).astype(jnp.float32)

    # Distinct node coordinates along each axis (np.mgrid structure guarantees
    # shift_x = row index repeated Ky times, shift_y = col index tiled Kx times).
    sxd = shift_x.astype(jnp.float32).reshape(Kx, Ky)[:, 0].reshape(Kx, 1)
    syd = shift_y.astype(jnp.float32).reshape(Kx, Ky)[0, :].reshape(Ky, 1)

    # Weights packed for the bilinear form: rows 0..Kx-1 = u, Kx..2Kx-1 = v.
    w = jnp.concatenate(
        [weight_u.reshape(Kx, Ky), weight_v.reshape(Kx, Ky)], axis=0
    ).astype(jnp.float32)                                     # (2*Kx, Ky)

    # Explicit VMEM budget: double-buffered (2, tile_n) in/out blocks plus the
    # f32 temporaries (bx, by, t), with 4x headroom, clamped to be safe on all
    # generations (v7x physical VMEM is 64 MiB).
    live_rows = 2 * (2 + 2) + (3 * Kx + Ky)
    vmem_limit = int(min(max(4 * 4 * tile_n * live_rows, 32 * 1024 * 1024),
                         64 * 1024 * 1024))

    kernel = functools.partial(_bspline2d_kernel,
                               exact_torch_knots=exact_torch_knots)

    out_t = pl.pallas_call(
        kernel,
        out_shape=jax.ShapeDtypeStruct((2, N), jnp.float32),
        grid_spec=pltpu.PrefetchScalarGridSpec(
            num_scalar_prefetch=0,
            grid=(n_tiles,),
            in_specs=[
                pl.BlockSpec(memory_space=pltpu.MemorySpace.SMEM),  # params
                pl.BlockSpec((2, tile_n), lambda i: (0, i)),        # points^T
                pl.BlockSpec((Kx, 1), lambda i: (0, 0)),            # node xs
                pl.BlockSpec((Ky, 1), lambda i: (0, 0)),            # node ys
                pl.BlockSpec((2 * Kx, Ky), lambda i: (0, 0)),       # weights
            ],
            out_specs=pl.BlockSpec((2, tile_n), lambda i: (0, i)),
        ),
        compiler_params=pltpu.CompilerParams(
            dimension_semantics=("parallel",),
            vmem_limit_bytes=vmem_limit),
    )(params, xt, sxd, syd, w)

    return out_t.T                                            # (N, 2)


# ----------------------------------------------------------------------------
# Pure-JAX reference: faithful port of the ORIGINAL PyTorch forward
# (4-piece Heaviside formulation, integer exponents), so the kernel's
# closed-form / separable rewrite is validated against the module semantics.
# ----------------------------------------------------------------------------
def _heaviside_ref(x, value):
    return jnp.where(x > 0.0, 1.0, jnp.where(x == 0.0, value, 0.0))


def _bspline1d_ref(x):
    H = _heaviside_ref
    B0 = H(x - 1.0, 0.0) * H(-x + 2.0, 0.0) * (2.0 - x) ** 3 / 6.0
    B1 = H(x, 1.0) * H(-x + 1.0, 1.0) * (3.0 * x ** 3 - 6.0 * x ** 2 + 4.0) / 6.0
    B2 = H(x + 1.0, 0.0) * H(-x, 1.0) * (-3.0 * x ** 3 - 6.0 * x ** 2 + 4.0) / 6.0
    B3 = H(x + 2.0, 0.0) * H(-x - 1.0, 0.0) * (x + 2.0) ** 3 / 6.0
    return B0 + B1 + B2 + B3


def bspline2d_ref(x, origin, spacing, shift_x, shift_y, weight_u, weight_v):
    coord = (x - origin) / spacing
    sw = (_bspline1d_ref(coord[:, 0:1] - shift_x)
          * _bspline1d_ref(coord[:, 1:2] - shift_y))
    u = jnp.sum(sw * weight_u, axis=-1, keepdims=True)
    v = jnp.sum(sw * weight_v, axis=-1, keepdims=True)
    return jnp.concatenate((u, v), axis=-1)


# ----------------------------------------------------------------------------
# Deterministic parameter construction (mirrors Bspline2D.__init__)
# ----------------------------------------------------------------------------
def make_bspline2d_params(origin_list, spacing_list, nodes_shape, key):
    origin = jnp.asarray(np.array(origin_list, dtype=np.float32).reshape(1, -1))
    spacing = jnp.asarray(np.array(spacing_list, dtype=np.float32).reshape(1, -1))

    nodes_coord = np.mgrid[0:nodes_shape[0], 0:nodes_shape[1]]
    shift_x = jnp.asarray(nodes_coord[0].reshape(1, -1).astype(np.float32))
    shift_y = jnp.asarray(nodes_coord[1].reshape(1, -1).astype(np.float32))

    K = int(np.prod(nodes_shape))
    # xavier_uniform_ on a (1, K) tensor: bound = sqrt(6 / (fan_in + fan_out))
    bound = float(np.sqrt(6.0 / (K + 1)))
    ku, kv = jax.random.split(key)
    weight_u = jax.random.uniform(ku, (1, K), jnp.float32, -bound, bound)
    weight_v = jax.random.uniform(kv, (1, K), jnp.float32, -bound, bound)
    return origin, spacing, shift_x, shift_y, weight_u, weight_v


if __name__ == "__main__":
    key = jax.random.PRNGKey(0)
    k_params, k_x = jax.random.split(key)

    nodes_shape = [8, 16]            # Kx=8, Ky=16 -> K = 128 control nodes
    origin_list = [0.5, -0.25]       # power-of-two spacing -> knot-exact test
    spacing_list = [0.5, 0.25]       # points stay exact through the divide

    (origin, spacing, shift_x, shift_y,
     weight_u, weight_v) = make_bspline2d_params(
        origin_list, spacing_list, nodes_shape, k_params)

    # Query points: random coords covering the node grid plus a few points
    # landing exactly on knots (coord == integer) to exercise the module's
    # Heaviside endpoint conventions (the x == 0 / x == -1 special cases).
    N = 1000                         # deliberately NOT a multiple of tile_n
    coord_knots = jnp.asarray(np.array(
        [[0.0, 0.0], [1.0, 1.0], [2.0, 5.0], [3.0, 15.0],
         [4.0, 2.0], [7.0, 0.0], [0.0, 7.0], [5.0, 9.0]], dtype=np.float32))
    coord_rand = jax.random.uniform(
        k_x, (N - coord_knots.shape[0], 2), jnp.float32,
        minval=-2.0, maxval=float(max(nodes_shape)) + 2.0)
    coords = jnp.concatenate([coord_knots, coord_rand], axis=0)
    x = origin + spacing * coords    # (N, 2) physical-space query points

    out = bspline2d_pallas(x, origin, spacing, shift_x, shift_y,
                           weight_u, weight_v, nodes_shape)
    out = jax.block_until_ready(out)

    ref = bspline2d_ref(x, origin, spacing, shift_x, shift_y,
                        weight_u, weight_v)
    np.testing.assert_allclose(np.asarray(out), np.asarray(ref),
                               rtol=1e-5, atol=1e-5)

    print("KERNEL_OK")
</pallas_src>

<mosaic_0001>
module attributes {stable_mosaic.version = 11 : i64} {
  func.func @_bspline2d_kernel(%arg0: i32, %arg1: memref<4xf32, #tpu.memory_space<smem>>, %arg2: memref<2x512xf32, #tpu.memory_space<vmem>>, %arg3: memref<8x1xf32, #tpu.memory_space<vmem>>, %arg4: memref<16x1xf32, #tpu.memory_space<vmem>>, %arg5: memref<16x16xf32, #tpu.memory_space<vmem>>, %arg6: memref<2x512xf32, #tpu.memory_space<vmem>>) attributes {dimension_semantics = [#tpu.dimension_semantics<parallel>], iteration_bounds = array<i64: 2>, scalar_prefetch = 0 : i64, scratch_operands = 0 : i64, tpu.core_type = #tpu.core_type<tc>, window_params = [{transform_indices = @transform_0, window_bounds = array<i64: 4>}, {transform_indices = @transform_1, window_bounds = array<i64: 2, 512>}, {pipeline_mode = #tpu.pipeline_mode<synchronous>, transform_indices = @transform_2, window_bounds = array<i64: 8, 1>}, {pipeline_mode = #tpu.pipeline_mode<synchronous>, transform_indices = @transform_3, window_bounds = array<i64: 16, 1>}, {pipeline_mode = #tpu.pipeline_mode<synchronous>, transform_indices = @transform_4, window_bounds = array<i64: 16, 16>}, {transform_indices = @transform_5, window_bounds = array<i64: 2, 512>}]} {
    %c0 = arith.constant 0 : index
    %0 = memref.load %arg1[%c0] : memref<4xf32, #tpu.memory_space<smem>>
    %c1 = arith.constant 1 : index
    %1 = memref.load %arg1[%c1] : memref<4xf32, #tpu.memory_space<smem>>
    %c2 = arith.constant 2 : index
    %2 = memref.load %arg1[%c2] : memref<4xf32, #tpu.memory_space<smem>>
    %c3 = arith.constant 3 : index
    %3 = memref.load %arg1[%c3] : memref<4xf32, #tpu.memory_space<smem>>
    %c0_0 = arith.constant 0 : index
    %c0_1 = arith.constant 0 : index
    %4 = vector.load %arg2[%c0_0, %c0_1] : memref<2x512xf32, #tpu.memory_space<vmem>>, vector<1x512xf32>
    %5 = vector.broadcast %0 : f32 to vector<1x512xf32>
    %6 = arith.subf %4, %5 : vector<1x512xf32>
    %7 = vector.broadcast %2 : f32 to vector<1x512xf32>
    %8 = arith.divf %6, %7 : vector<1x512xf32>
    %c1_2 = arith.constant 1 : index
    %c0_3 = arith.constant 0 : index
    %9 = vector.load %arg2[%c1_2, %c0_3] : memref<2x512xf32, #tpu.memory_space<vmem>>, vector<1x512xf32>
    %10 = vector.broadcast %1 : f32 to vector<1x512xf32>
    %11 = arith.subf %9, %10 : vector<1x512xf32>
    %12 = vector.broadcast %3 : f32 to vector<1x512xf32>
    %13 = arith.divf %11, %12 : vector<1x512xf32>
    %c0_4 = arith.constant 0 : index
    %c0_5 = arith.constant 0 : index
    %14 = vector.load %arg3[%c0_4, %c0_5] : memref<8x1xf32, #tpu.memory_space<vmem>>, vector<8x1xf32>
    %15 = vector.broadcast %8 : vector<1x512xf32> to vector<8x512xf32>
    %16 = vector.broadcast %14 : vector<8x1xf32> to vector<8x512xf32>
    %17 = arith.subf %15, %16 : vector<8x512xf32>
    %18 = math.absf %17 : vector<8x512xf32>
    %cst = arith.constant 2.000000e+00 : f32
    %19 = vector.broadcast %cst : f32 to vector<8x512xf32>
    %20 = arith.subf %19, %18 : vector<8x512xf32>
    %cst_6 = arith.constant 0.000000e+00 : f32
    %21 = vector.broadcast %cst_6 : f32 to vector<8x512xf32>
    %22 = arith.maximumf %20, %21 : vector<8x512xf32>
    %cst_7 = arith.constant 1.000000e+00 : f32
    %23 = vector.broadcast %cst_7 : f32 to vector<8x512xf32>
    %24 = arith.subf %23, %18 : vector<8x512xf32>
    %cst_8 = arith.constant 0.000000e+00 : f32
    %25 = vector.broadcast %cst_8 : f32 to vector<8x512xf32>
    %26 = arith.maximumf %24, %25 : vector<8x512xf32>
    %27 = arith.mulf %22, %22 : vector<8x512xf32>
    %28 = arith.mulf %27, %22 : vector<8x512xf32>
    %29 = arith.mulf %26, %26 : vector<8x512xf32>
    %30 = arith.mulf %29, %26 : vector<8x512xf32>
    %cst_9 = arith.constant 4.000000e+00 : f32
    %31 = vector.broadcast %cst_9 : f32 to vector<8x512xf32>
    %32 = arith.mulf %31, %30 : vector<8x512xf32>
    %33 = arith.subf %28, %32 : vector<8x512xf32>
    %cst_10 = arith.constant 0.166666672 : f32
    %34 = vector.broadcast %cst_10 : f32 to vector<8x512xf32>
    %35 = arith.mulf %33, %34 : vector<8x512xf32>
    %cst_11 = arith.constant 0.000000e+00 : f32
    %36 = vector.broadcast %cst_11 : f32 to vector<8x512xf32>
    %37 = arith.cmpf oeq, %17, %36 : vector<8x512xf32>
    %cst_12 = arith.constant -1.000000e+00 : f32
    %38 = vector.broadcast %cst_12 : f32 to vector<8x512xf32>
    %39 = arith.cmpf oeq, %17, %38 : vector<8x512xf32>
    %cst_13 = arith.constant -0.166666672 : f32
    %cst_14 = arith.constant 0.000000e+00 : f32
    %40 = vector.broadcast %cst_13 : f32 to vector<8x512xf32>
    %41 = vector.broadcast %cst_14 : f32 to vector<8x512xf32>
    %42 = arith.select %39, %40, %41 : vector<8x512xi1>, vector<8x512xf32>
    %cst_15 = arith.constant 0.666666686 : f32
    %43 = vector.broadcast %cst_15 : f32 to vector<8x512xf32>
    %44 = arith.select %37, %43, %42 : vector<8x512xi1>, vector<8x512xf32>
    %45 = arith.addf %35, %44 : vector<8x512xf32>
    %c0_16 = arith.constant 0 : index
    %c0_17 = arith.constant 0 : index
    %46 = vector.load %arg4[%c0_16, %c0_17] : memref<16x1xf32, #tpu.memory_space<vmem>>, vector<16x1xf32>
    %47 = vector.broadcast %13 : vector<1x512xf32> to vector<16x512xf32>
    %48 = vector.broadcast %46 : vector<16x1xf32> to vector<16x512xf32>
    %49 = arith.subf %47, %48 : vector<16x512xf32>
    %50 = math.absf %49 : vector<16x512xf32>
    %cst_18 = arith.constant 2.000000e+00 : f32
    %51 = vector.broadcast %cst_18 : f32 to vector<16x512xf32>
    %52 = arith.subf %51, %50 : vector<16x512xf32>
    %cst_19 = arith.constant 0.000000e+00 : f32
    %53 = vector.broadcast %cst_19 : f32 to vector<16x512xf32>
    %54 = arith.maximumf %52, %53 : vector<16x512xf32>
    %cst_20 = arith.constant 1.000000e+00 : f32
    %55 = vector.broadcast %cst_20 : f32 to vector<16x512xf32>
    %56 = arith.subf %55, %50 : vector<16x512xf32>
    %cst_21 = arith.constant 0.000000e+00 : f32
    %57 = vector.broadcast %cst_21 : f32 to vector<16x512xf32>
    %58 = arith.maximumf %56, %57 : vector<16x512xf32>
    %59 = arith.mulf %54, %54 : vector<16x512xf32>
    %60 = arith.mulf %59, %54 : vector<16x512xf32>
    %61 = arith.mulf %58, %58 : vector<16x512xf32>
    %62 = arith.mulf %61, %58 : vector<16x512xf32>
    %cst_22 = arith.constant 4.000000e+00 : f32
    %63 = vector.broadcast %cst_22 : f32 to vector<16x512xf32>
    %64 = arith.mulf %63, %62 : vector<16x512xf32>
    %65 = arith.subf %60, %64 : vector<16x512xf32>
    %cst_23 = arith.constant 0.166666672 : f32
    %66 = vector.broadcast %cst_23 : f32 to vector<16x512xf32>
    %67 = arith.mulf %65, %66 : vector<16x512xf32>
    %cst_24 = arith.constant 0.000000e+00 : f32
    %68 = vector.broadcast %cst_24 : f32 to vector<16x512xf32>
    %69 = arith.cmpf oeq, %49, %68 : vector<16x512xf32>
    %cst_25 = arith.constant -1.000000e+00 : f32
    %70 = vector.broadcast %cst_25 : f32 to vector<16x512xf32>
    %71 = arith.cmpf oeq, %49, %70 : vector<16x512xf32>
    %cst_26 = arith.constant -0.166666672 : f32
    %cst_27 = arith.constant 0.000000e+00 : f32
    %72 = vector.broadcast %cst_26 : f32 to vector<16x512xf32>
    %73 = vector.broadcast %cst_27 : f32 to vector<16x512xf32>
    %74 = arith.select %71, %72, %73 : vector<16x512xi1>, vector<16x512xf32>
    %cst_28 = arith.constant 0.666666686 : f32
    %75 = vector.broadcast %cst_28 : f32 to vector<16x512xf32>
    %76 = arith.select %69, %75, %74 : vector<16x512xi1>, vector<16x512xf32>
    %77 = arith.addf %67, %76 : vector<16x512xf32>
    %c0_29 = arith.constant 0 : index
    %c0_30 = arith.constant 0 : index
    %78 = vector.load %arg5[%c0_29, %c0_30] : memref<16x16xf32, #tpu.memory_space<vmem>>, vector<16x16xf32>
    %cst_31 = arith.constant dense<0.000000e+00> : vector<16x512xf32>
    %79 = tpu.matmul %78, %77, %cst_31 {dimension_numbers = #tpu.dot_dimension_numbers<[1], [0], [0], [1], [0, 0, 1, 1], [], []>} : vector<16x16xf32>, vector<16x512xf32>, vector<16x512xf32> -> vector<16x512xf32>
    %80 = vector.extract_strided_slice %79 {offsets = [0, 0], sizes = [8, 512], strides = [1, 1]} : vector<16x512xf32> to vector<8x512xf32>
    %81 = arith.mulf %45, %80 : vector<8x512xf32>
    %cst_32 = arith.constant dense<0.000000e+00> : vector<512xf32>
    %82 = vector.multi_reduction <add>, %81, %cst_32 [0] : vector<8x512xf32> to vector<512xf32>
    %83 = vector.shape_cast %82 : vector<512xf32> to vector<1x512xf32>
    %84 = vector.extract_strided_slice %79 {offsets = [8, 0], sizes = [8, 512], strides = [1, 1]} : vector<16x512xf32> to vector<8x512xf32>
    %85 = arith.mulf %45, %84 : vector<8x512xf32>
    %cst_33 = arith.constant dense<0.000000e+00> : vector<512xf32>
    %86 = vector.multi_reduction <add>, %85, %cst_33 [0] : vector<8x512xf32> to vector<512xf32>
    %87 = vector.shape_cast %86 : vector<512xf32> to vector<1x512xf32>
    %88 = tpu.concatenate %83, %87 in 0 : vector<1x512xf32>, vector<1x512xf32> -> vector<2x512xf32>
    %c0_34 = arith.constant 0 : index
    %c0_35 = arith.constant 0 : index
    %89 = vector.load %arg6[%c0_34, %c0_35] : memref<2x512xf32, #tpu.memory_space<vmem>>, vector<2x512xf32>
    tpu.vector_store %arg6[%c0_34, %c0_35], %88 {strides = array<i32>} : memref<2x512xf32, #tpu.memory_space<vmem>>, vector<2x512xf32>,
    return
  }
  func.func @transform_0(%arg0: i32) -> i32 {
    %c0_i32 = arith.constant 0 : i32
    %c0_i32_0 = arith.constant 0 : i32
    return %c0_i32 : i32
  }
  func.func @transform_1(%arg0: i32) -> (i32, i32) {
    %c0_i32 = arith.constant 0 : i32
    %c0_i32_0 = arith.constant 0 : i32
    return %c0_i32, %arg0 : i32, i32
  }
  func.func @transform_2(%arg0: i32) -> (i32, i32) {
    %c0_i32 = arith.constant 0 : i32
    %c0_i32_0 = arith.constant 0 : i32
    %c0_i32_1 = arith.constant 0 : i32
    return %c0_i32, %c0_i32_0 : i32, i32
  }
  func.func @transform_3(%arg0: i32) -> (i32, i32) {
    %c0_i32 = arith.constant 0 : i32
    %c0_i32_0 = arith.constant 0 : i32
    %c0_i32_1 = arith.constant 0 : i32
    return %c0_i32, %c0_i32_0 : i32, i32
  }
  func.func @transform_4(%arg0: i32) -> (i32, i32) {
    %c0_i32 = arith.constant 0 : i32
    %c0_i32_0 = arith.constant 0 : i32
    %c0_i32_1 = arith.constant 0 : i32
    return %c0_i32, %c0_i32_0 : i32, i32
  }
  func.func @transform_5(%arg0: i32) -> (i32, i32) {
    %c0_i32 = arith.constant 0 : i32
    %c0_i32_0 = arith.constant 0 : i32
    return %c0_i32, %arg0 : i32, i32
  }
}

</mosaic_0001>

<bundles_post_ra>
// kernel: tpu_custom_call.1
= control target key start
LH: loop header
LB: loop body
LE: loop exit
PB: predicated region body
PF: predicated region fallthrough
CT: control target
= control target key end

     0   :  { %10 = vsyncpa [#allocation4], 0  ;;  %s1307_s0 = inlined_call_operand.vmem [shape: f32[4], index: 0, kind: input, shape index: {}]   ;;  %s1308_s1 = inlined_call_operand.vmem [shape: f32[2,1000], index: 1, kind: input, shape index: {}]   ;;  %s1309_s2 = inlined_call_operand.vmem [shape: f32[8,1], index: 2, kind: input, shape index: {}]   ;;  %s1310_s3 = inlined_call_operand.vmem [shape: f32[16,1], index: 3, kind: input, shape index: {}]   ;;  %s1311_s4 = inlined_call_operand.vmem [shape: f32[16,16], index: 4, kind: input, shape index: {}]   ;;  %s1312_s5 = inlined_call_operand.hbm [shape: f32[2,1000], index: 5, kind: output, shape index: {}]  }
   0x1   :  { %11 = vsyncpa [#allocation3], 0 }
   0x2   :  { %13 = vsyncpa [#allocation3 + $0x1], 0  ;;  %s1074_s18 = smov 0   ;;  %s1076_s19 = smov 0  }
   0x3   :  { %s1078_s20 = smov 0   ;;  %s1080_s21 = smov 0  }
   0x4 LB: > { %s1095_s22 = sadd.s32 4294967295, %s1037_s21   ;;  %s866_s23 = sadd.s32 4294967294, %s1037_s21   ;;  %s1037_s21 = sphi %s1080_s21, %s1319_s21   ;;  %s1033_s20 = sphi %s1078_s20, %s1318_s20   ;;  %s1029_s19 = sphi %s1076_s19, %s1317_s19   ;;  %s1025_s18 = sphi %s1074_s18, %s1316_s18  }
   0x5   : > { %s1099_s24 = sadd.s32 1, %s1037_s21   ;;  %s136_s25 = sadd.s32 1, %s1033_s20 }
   0x6   : > { %s133_s26 = ssub.s32 %s1037_s21, %s1099_s24  ;;  %p146_p0 = scmp.ne.s32.totalorder %s1033_s20, %s1029_s19 }
   0x7   : > { %p134_p1 = scmp.eq.s32.totalorder %s133_s26, 0  ;;  %p147_p2 = scmp.eq.s32.totalorder %s1095_s22, 1 }
   0x8   : > { %p152_p3 = scmp.ne.s32.totalorder %s1029_s19, %s1025_s18  ;;  %p153_p4 = scmp.eq.s32.totalorder %s866_s23, 1 }
   0x9   : > { %s1110_s27 = scalar_select %p134_p1, %s1033_s20, %s136_s25  }
   0xa   : > { %p1112_p5 = por %p147_p2, %p146_p0  ;;  %p1116_p6 = por %p153_p4, %p152_p3 }
   0xb   : > { %p867_p7 = scmp.ge.s32.totalorder %s1037_s21, 1  ;;  %p160_p8 = scmp.lt.s32.totalorder %s1037_s21, 3 }
   0xc   : > { %p911_p9 = scmp.eq.s32.totalorder %s1095_s22, 0  ;;  %s173_s8 = sshll.u32 %s1307_s0, 4  ;;  %s174_s8 = int_to_ptr.vmem [resolvable:$true] %s173_s8 }
   0xd   : > { %p1123_p10 = pnand %p867_p7, %p160_p8  ;;  %s956_s9 = scalar_lea.vmem %s174_s8, 16 }
   0xe   : > { %p957_p13 = scmp.ne.s32.totalorder %s174_s8, %s956_s9  ;;  %p964_p3 = scmp.lt.s32.totalorder %s174_s8, %s174_s8 }
   0xf   : > { %p903_p11 = pneg %p1123_p10  ;;  %p965_p4 = scmp.lt.s32.totalorder %s956_s9, %s956_s9 }
  0x11   : > { %p904_p12 = pnand %p911_p9, %p903_p11  ;;  %p966_p7 = por %p965_p4, %p964_p3 }
  0x13   : > { %p958_p0 = pneg %p904_p12 }
  0x15   : > { %p959_p1 = pnand %p958_p0, %p957_p13 }
  0x17   : > { %p960_p2 = pneg %p959_p1 }
  0x19   : > { %p967_p8 = pnand %p966_p7, %p960_p2 }
  0x1b   : > { %970 = shalt.err (!%p967_p8)
}
  0x1c   : > { %s1039_s10 = smov [#allocation2]   ;;  %204 = sbr.rel (%p1123_p10) target bundleno = 469 (0x1d5), region = 40 }
  0x1d   : > { %906 = dma.vmem_to_smem (!%p904_p12), %s174_s8, 16, %s1039_s10, [#allocation4]  }
  0x23   : > { %1016 = dma.done.wait (%p911_p9), [#allocation4], 16  }
  0x24   : > { %1018 = vsyncadd (%p911_p9), [#allocation4], 4294967280 }
  0x25   : > { %210 = sfence }
  0x26   : > { %v356_v0 = vld [vmem:[%s1310_s3] sm:$0xff]  ;;  %v1040_v1 = vmov 0   ;;  %v357_v2 = vld [vmem:[%s1310_s3 + $0x8] sm:$0xff]  ;;  %v1041_v3 = vmov 0.0   ;;  %s873_s15 = sshll.u32 %s1095_s22, 2  ;;  %s876_s23 = sld [smem:[#allocation2 + $0x2]]  ;;  %v259_v6 = vlaneseq }
  0x27   : > { %950 = vset.pattern.permute.xlu0 %v1040_v1  ;;  %951 = vset.pattern.permute.xlu1 %v1040_v1  ;;  %p234_p9 = scmp.lt.s32.totalorder %s873_s15, 7  ;;  %v257_v4 = vld [vmem:[%s1309_s2] sm:$0xff]  ;;  %s240_s25 = sld [smem:[#allocation2]] }
  0x28   : > { %381 = vperm.xlu0 %950, %v356_v0   ;;  %606 = vmatprep.mubr.f32.mxu0 %v1041_v3  ;;  %v1155_v9 = vshrl.u32 %v259_v6, 7  ;;  %s877_s8 = sld [smem:[#allocation2 + $0x3]]  ;;  %s875_s9 = sld [smem:[#allocation2 + $0x1]] }
  0x29   : > { %683 = vmatprep.mubr.f32.mxu1 %v1041_v3  ;;  %281 = vperm.xlu1 %951, %v257_v4   ;;  %s1321_s15 = smov (!%p234_p9, %s873_s15), 7  ;;  %s230_s14 = sand.u32 1, %s1029_s19  }
  0x2a   : > { %s874_s26 = sshll.u32 %s1321_s15, 1  ;;  %v261_v12 = vsub.s32 0, %v1155_v9  ;;  %v265_v13 = vsub.s32 1, %v1155_v9  ;;  %v269_v14 = vsub.s32 2, %v1155_v9  ;;  %v273_v15 = vsub.s32 3, %v1155_v9  ;;  %s872_s15 = sshll.u32 %s230_s14, 3 }
  0x2b   : > { %s237_s7 = scalar_lea.vmem %s1308_s1, %s874_s26  ;;  %s888_s16 = sshll.u32 %s1095_s22, 7 }
  0x2c   : > { %386 = vperm.xlu0 %950, %v357_v2   ;;  %v247_v5 = vstv %s876_s23  ;;  %v244_v7 = vld [vmem:[%s237_s7] ss:$2 sm:$0xf]  ;;  %v878_v22 = vld [vmem:[%s237_s7 + $0x1] ss:$2 sm:$0xf]  ;;  %s1265_s30 = scalar_lea.hbm %s1312_s5, %s888_s16 }
  0x2d   : > { %952 = vrcp.f32 %v247_v5  ;;  %v245_v8 = vstv %s240_s25  ;;  %s232_s17 = scalar_lea.vmem [#allocation5], %s872_s15  ;;  %s781_s6 = scalar_lea.sflag [#allocation3], %s230_s14 }
  0x2e   : > { %v246_v10 = vsub.f32 %v244_v7, %v245_v8  ;;  %v254_v21 = vstv %s877_s8  ;;  %v252_v23 = vstv %s875_s9  ;;  %s795_s23 = sshll.u32 %s232_s17, 4  ;;  %s1043_s22 = smov [#allocation5]   ;;  %s1267_s23 = int_to_ptr.vmem [resolvable:$true] %s795_s23 }
  0x2f   : > { %954 = vrcp.f32 %v254_v21  ;;  %v253_v24 = vsub.f32 %v878_v22, %v252_v23  ;;  %s971_s7 = scalar_lea.vmem %s1267_s23, 128  ;;  %s975_s8 = sshll.u32 %s1043_s22, 4  ;;  %s976_s8 = int_to_ptr.vmem [resolvable:$false] %s975_s8 }
  0x30   : > { %p972_p10 = scmp.ne.s32.totalorder %s1267_s23, %s971_s7  ;;  %s977_s9 = scalar_lea.vmem %s976_s8, 256 }
  0x31   : > { %p978_p13 = scmp.lt.s32.totalorder %s1267_s23, %s976_s8  ;;  %p979_p0 = scmp.lt.s32.totalorder %s977_s9, %s971_s7 }
  0x32   : > { %p973_p11 = pnand %p972_p10, %p1112_p5 }
  0x33   : > { %p980_p1 = por %p979_p0, %p978_p13 }
  0x34   : > { %p974_p12 = pneg %p973_p11 }
  0x36   : > { %p981_p2 = pnand %p980_p1, %p974_p12 }
  0x37   : > { %v953_v11 = vpop.eup %952 }
  0x38   : > { %v249_v16 = vmul.f32 %v953_v11, %v246_v10 }
  0x39   : > { %v955_v25 = vpop.eup %954 }
  0x3a   : > { %v1161_v17 = vrot.slane %v249_v16, %v261_v12  ;;  %v1163_v18 = vrot.slane %v249_v16, %v265_v13  ;;  %v1165_v19 = vrot.slane %v249_v16, %v269_v14  ;;  %v1167_v20 = vrot.slane %v249_v16, %v273_v15 }
  0x3b   : > { %v256_v26 = vmul.f32 %v955_v25, %v253_v24 }
  0x3d   : > { %v366_v27 = vrot.slane %v256_v26, %v265_v13  ;;  %v374_v28 = vrot.slane %v256_v26, %v273_v15  ;;  %v362_v29 = vrot.slane %v256_v26, %v261_v12  ;;  %v370_v31 = vrot.slane %v256_v26, %v269_v14 }
  0xa7   : > { %v382_v30 = vpop.permute.xlu0 %381 }
  0xa8   : > { %v390_v32 = vsub.f32 %v366_v27, %v382_v30  ;;  %v1169_v33 = vsub.f32 %v374_v28, %v382_v30  ;;  %v1171_v34 = vsub.f32 %v362_v29, %v382_v30  ;;  %v1173_v37 = vsub.f32 %v370_v31, %v382_v30 }
  0xaa   : > { %v398_v35 = vand.u32 2147483647, %v390_v32  ;;  %v400_v38 = vand.u32 2147483647, %v1169_v33  ;;  %v397_v43 = vand.u32 2147483647, %v1171_v34 }
  0xab   : > { %v387_v36 = vpop.permute.xlu0 %386  ;;  %vm502_vm0 = vcmp.eq.f32.partialorder %v390_v32, -1.0  ;;  %v399_v53 = vand.u32 2147483647, %v1173_v37  ;;  %vm494_vm1 = vcmp.eq.f32.partialorder %v390_v32, 0.0  ;;  %vm496_vm4 = vcmp.eq.f32.partialorder %v1169_v33, 0.0 }
  0xac   : > { %v1176_v39 = vsub.f32 %v362_v29, %v387_v36  ;;  %v394_v40 = vsub.f32 %v366_v27, %v387_v36  ;;  %v1178_v41 = vsub.f32 %v370_v31, %v387_v36  ;;  %v1180_v42 = vsub.f32 %v374_v28, %v387_v36 }
  0xad   : > { %v406_v44 = vsub.f32 2.0, %v398_v35  ;;  %v422_v45 = vsub.f32 1.0, %v398_v35  ;;  %v408_v52 = vsub.f32 2.0, %v400_v38  ;;  %v510_v54 = vsel %vm502_vm0, -0.16666667, %v1041_v3 }
  0xae   : > { %v401_v46 = vand.u32 2147483647, %v1176_v39  ;;  %v402_v47 = vand.u32 2147483647, %v394_v40  ;;  %v403_v48 = vand.u32 2147483647, %v1178_v41 }
  0xaf   : > { %v404_v49 = vand.u32 2147483647, %v1180_v42  ;;  %v414_v50 = vmax.f32 %v406_v44, 0.0  ;;  %v430_v51 = vmax.f32 %v422_v45, 0.0  ;;  %vm498_vm2 = vcmp.eq.f32.partialorder %v394_v40, 0.0 }
  0xb0   : > { %v410_v55 = vsub.f32 2.0, %v402_v47  ;;  %v426_v56 = vsub.f32 1.0, %v402_v47  ;;  %v409_v59 = vsub.f32 2.0, %v401_v46  ;;  %v1188_v60 = vsub.f32 2.0, %v403_v48 }
  0xb1   : > { %v438_v57 = vmul.f32 %v414_v50, %v414_v50  ;;  %v454_v58 = vmul.f32 %v430_v51, %v430_v51  ;;  %vm506_vm3 = vcmp.eq.f32.partialorder %v394_v40, -1.0  ;;  %v412_v61 = vsub.f32 2.0, %v404_v49 }
  0xb2   : > { %v418_v62 = vmax.f32 %v410_v55, 0.0  ;;  %v434_v63 = vmax.f32 %v426_v56, 0.0  ;;  %v416_v1 = vmax.f32 %v408_v52, 0.0  ;;  %v424_v5 = vsub.f32 1.0, %v400_v38 }
  0xb3   : > { %v462_v0 = vmul.f32 %v454_v58, %v430_v51  ;;  %v446_v2 = vmul.f32 %v438_v57, %v414_v50  ;;  %v420_v4 = vmax.f32 %v412_v61, 0.0  ;;  %v428_v6 = vsub.f32 1.0, %v404_v49 }
  0xb4   : > { %v442_v7 = vmul.f32 %v418_v62, %v418_v62  ;;  %v458_v8 = vmul.f32 %v434_v63, %v434_v63  ;;  %v514_v11 = vsel %vm506_vm3, -0.16666667, %v1041_v3  ;;  %v425_v12 = vsub.f32 1.0, %v401_v46 }
  0xb5   : > { %v470_v10 = vmul.f32 4.0, %v462_v0  ;;  %v1192_v13 = vsub.f32 1.0, %v403_v48  ;;  %v432_v14 = vmax.f32 %v424_v5, 0.0  ;;  %v436_v15 = vmax.f32 %v428_v6, 0.0 }
  0xb6   : > { %v466_v16 = vmul.f32 %v458_v8, %v434_v63  ;;  %v440_v22 = vmul.f32 %v416_v1, %v416_v1  ;;  %v444_v23 = vmul.f32 %v420_v4, %v420_v4  ;;  %v518_v24 = vsel %vm494_vm1, 0.6666667, %v510_v54 }
  0xb7   : > { %v478_v21 = vsub.f32 %v446_v2, %v470_v10  ;;  %v522_v25 = vsel %vm498_vm2, 0.6666667, %v514_v11  ;;  %v456_v26 = vmul.f32 %v432_v14, %v432_v14  ;;  %v460_v27 = vmul.f32 %v436_v15, %v436_v15 }
  0xb8   : > { %v450_v28 = vmul.f32 %v442_v7, %v418_v62  ;;  %v474_v29 = vmul.f32 4.0, %v466_v16  ;;  %vm500_vm5 = vcmp.eq.f32.partialorder %v1180_v42, 0.0  ;;  %vm504_vm6 = vcmp.eq.f32.partialorder %v1169_v33, -1.0 }
  0xb9   : > { %v486_v30 = vmul.f32 0.16666667, %v478_v21  ;;  %v464_v31 = vmul.f32 %v456_v26, %v432_v14  ;;  %v468_v35 = vmul.f32 %v460_v27, %v436_v15  ;;  %vm508_vm7 = vcmp.eq.f32.partialorder %v1180_v42, -1.0 }
  0xba   : > { %v482_v36 = vsub.f32 %v450_v28, %v474_v29  ;;  %v448_v38 = vmul.f32 %v440_v22, %v416_v1  ;;  %v452_v44 = vmul.f32 %v444_v23, %v420_v4  ;;  %v512_v32 = vsel %vm504_vm6, -0.16666667, %v1041_v3 }
  0xbb   : > { %v472_v40 = vmul.f32 4.0, %v464_v31  ;;  %v476_v45 = vmul.f32 4.0, %v468_v35  ;;  %v405_v46 = vsub.f32 2.0, %v397_v43  ;;  %v417_v47 = vmax.f32 %v409_v59, 0.0 }
  0xbc   : > { %v490_v48 = vmul.f32 0.16666667, %v482_v36  ;;  %v516_v49 = vsel %vm508_vm7, -0.16666667, %v1041_v3  ;;  %v421_v50 = vsub.f32 1.0, %v397_v43  ;;  %v433_v51 = vmax.f32 %v425_v12, 0.0 }
  0xbd   : > { %v526_v52 = vadd.f32 %v518_v24, %v486_v30  ;;  %v480_v54 = vsub.f32 %v448_v38, %v472_v40  ;;  %v484_v55 = vsub.f32 %v452_v44, %v476_v45  ;;  %v413_v56 = vmax.f32 %v405_v46, 0.0 }
  0xbe   : > { %v530_v57 = vadd.f32 %v522_v25, %v490_v48  ;;  %v429_v58 = vmax.f32 %v421_v50, 0.0  ;;  %v441_v61 = vmul.f32 %v417_v47, %v417_v47  ;;  %v457_v62 = vmul.f32 %v433_v51, %v433_v51 }
  0xbf   : > { %v488_v63 = vmul.f32 0.16666667, %v480_v54  ;;  %v492_v0 = vmul.f32 0.16666667, %v484_v55  ;;  %v520_v59 = vsel %vm496_vm4, 0.6666667, %v512_v32  ;;  %v437_v1 = vmul.f32 %v413_v56, %v413_v56 }
  0xc0   : > { %v889_v2 = vpack.c.bf16 %v530_v57, %v526_v52  ;;  %v524_v4 = vsel %vm500_vm5, 0.6666667, %v516_v49  ;;  %v453_v43 = vmul.f32 %v429_v58, %v429_v58  ;;  %v465_v5 = vmul.f32 %v457_v62, %v433_v51  ;;  %v533_v51 = vld [vmem:[%s1311_s4] sm:$0xff] }
  0xc1   : > { %v528_v6 = vadd.f32 %v520_v59, %v488_v63  ;;  %v532_v7 = vadd.f32 %v524_v4, %v492_v0  ;;  %vm497_vm8 = vcmp.eq.f32.partialorder %v1176_v39, 0.0  ;;  %vm505_vm9 = vcmp.eq.f32.partialorder %v1176_v39, -1.0 }
  0xc2   : > { %890 = vmatprep.subr.bf16.mxu0 %v889_v2  ;;  %v449_v8 = vmul.f32 %v441_v61, %v417_v47  ;;  %v461_v10 = vmul.f32 %v453_v43, %v429_v58  ;;  %v473_v11 = vmul.f32 4.0, %v465_v5  ;;  %vm501_vm10 = vcmp.eq.f32.partialorder %v1171_v34, -1.0  ;;  %v282_v61 = vpop.permute.xlu1 %281 }
  0xc3   : > { %v893_v33 = vpack.c.bf16 %v532_v7, %v528_v6  ;;  %v445_v12 = vmul.f32 %v437_v1, %v413_v56  ;;  %v513_v14 = vsel %vm505_vm9, -0.16666667, %v1041_v3  ;;  %v407_v42 = vsub.f32 2.0, %v399_v53 }
  0xc4   : > { %v469_v15 = vmul.f32 4.0, %v461_v10  ;;  %v481_v16 = vsub.f32 %v449_v8, %v473_v11  ;;  %v419_v21 = vmax.f32 %v1188_v60, 0.0  ;;  %v423_v22 = vsub.f32 1.0, %v399_v53 }
  0xc5   : > { %894 = vmatprep.subr.bf16.mxu1 %v893_v33  ;;  %vm493_vm11 = vcmp.eq.f32.partialorder %v1171_v34, 0.0  ;;  %v415_v23 = vmax.f32 %v407_v42, 0.0  ;;  %v435_v24 = vmax.f32 %v1192_v13, 0.0  ;;  %v509_v27 = vsel %vm501_vm10, -0.16666667, %v1041_v3 }
  0xc6   : > { %v477_v25 = vsub.f32 %v445_v12, %v469_v15  ;;  %v489_v26 = vmul.f32 0.16666667, %v481_v16  ;;  %v431_v28 = vmax.f32 %v423_v22, 0.0  ;;  %v521_v29 = vsel %vm497_vm8, 0.6666667, %v513_v14 }
  0xc7   : > { %v443_v30 = vmul.f32 %v419_v21, %v419_v21  ;;  %v459_v31 = vmul.f32 %v435_v24, %v435_v24  ;;  %v439_v36 = vmul.f32 %v415_v23, %v415_v23  ;;  %v517_v38 = vsel %vm493_vm11, 0.6666667, %v509_v27 }
  0xc8   : > { %v485_v60 = vmul.f32 0.16666667, %v477_v25  ;;  %v529_v35 = vadd.f32 %v521_v29, %v489_v26  ;;  %v455_v53 = vmul.f32 %v431_v28, %v431_v28  ;;  %vm507_vm12 = vcmp.eq.f32.partialorder %v1178_v41, -1.0 }
  0xc9   : > { %v467_v44 = vmul.f32 %v459_v31, %v435_v24  ;;  %v451_v13 = vmul.f32 %v443_v30, %v419_v21  ;;  %vm503_vm13 = vcmp.eq.f32.partialorder %v1173_v37, -1.0  ;;  %v447_v46 = vmul.f32 %v439_v36, %v415_v23 }
  0xca   : > { %v525_v34 = vadd.f32 %v517_v38, %v485_v60  ;;  %v463_v32 = vmul.f32 %v455_v53, %v431_v28  ;;  %vm499_vm14 = vcmp.eq.f32.partialorder %v1178_v41, 0.0  ;;  %v515_v48 = vsel %vm507_vm12, -0.16666667, %v1041_v3 }
  0xcb   : > { %v475_v40 = vmul.f32 4.0, %v467_v44  ;;  %vm495_vm15 = vcmp.eq.f32.partialorder %v1173_v37, 0.0  ;;  %v511_v50 = vsel %vm503_vm13, -0.16666667, %v1041_v3  ;;  %vm535_vm0 = vcmask 130048   ;;  %v534_v37 = vld [vmem:[%s1311_s4 + $0x8] sm:$0xff] }
  0xcc   : > { %v891_v45 = vpack.c.bf16 %v529_v35, %v525_v34  ;;  %v471_v39 = vmul.f32 4.0, %v463_v32  ;;  %v523_v55 = vsel %vm499_vm14, 0.6666667, %v515_v48  ;;  %v519_v56 = vsel %vm495_vm15, 0.6666667, %v511_v50 }
  0xcd   : > { %v483_v47 = vsub.f32 %v451_v13, %v475_v40  ;;  %v284_v62 = vsub.f32 %v1161_v17, %v282_v61  ;;  %v285_v63 = vsub.f32 %v1163_v18, %v282_v61  ;;  %v1240_v1 = vsub.f32 %v1165_v19, %v282_v61 }
  0xce   : > { %892 = vmatpush1.bf16.msra.mxu0 %v891_v45  ;;  %v479_v49 = vsub.f32 %v447_v46, %v471_v39  ;;  %v1243_v4 = vsub.f32 %v1167_v20, %v282_v61  ;;  %vm752_vm9 = vcmask 1040384  }
  0xcf   : > { %v491_v52 = vmul.f32 0.16666667, %v483_v47  ;;  %v288_v0 = vand.u32 2147483647, %v284_v62  ;;  %v289_v59 = vand.u32 2147483647, %v285_v63 }
  0xd0   : > { %v487_v54 = vmul.f32 0.16666667, %v479_v49  ;;  %v290_v5 = vand.u32 2147483647, %v1240_v1  ;;  %v291_v8 = vand.u32 2147483647, %v1243_v4 }
  0xd1   : > { %v531_v57 = vadd.f32 %v523_v55, %v491_v52  ;;  %879 = vmatmul.mubr.msk.f32.vlgmr.msra.gmra.mrb[0].mxu0 %vm535_vm0, %v533_v51  ;;  %v300_v2 = vsub.f32 1.0, %v288_v0  ;;  %v301_v43 = vsub.f32 1.0, %v289_v59  ;;  %v292_v6 = vsub.f32 2.0, %v288_v0 }
  0xd2   : > { %v527_v41 = vadd.f32 %v519_v56, %v487_v54  ;;  %612 = vmatprep.mubr.f32.mxu0 %v1041_v3  ;;  %v293_v10 = vsub.f32 2.0, %v289_v59  ;;  %v302_v33 = vsub.f32 1.0, %v290_v5  ;;  %v303_v19 = vsub.f32 1.0, %v291_v8 }
  0xd3   : > { %v304_v7 = vmax.f32 %v300_v2, 0.0  ;;  %v305_v17 = vmax.f32 %v301_v43, 0.0  ;;  %v296_v11 = vmax.f32 %v292_v6, 0.0  ;;  %v294_v16 = vsub.f32 2.0, %v290_v5 }
  0xd4   : > { %v895_v58 = vpack.c.bf16 %v531_v57, %v527_v41  ;;  %v297_v12 = vmax.f32 %v293_v10, 0.0  ;;  %v306_v20 = vmax.f32 %v302_v33, 0.0  ;;  %v295_v23 = vsub.f32 2.0, %v291_v8 }
  0xd5   : > { %880 = vmatmul.mubr.msk.f32.gmra.mrb[2].mxu0 %vm535_vm0, %v534_v37  ;;  %v316_v18 = vmul.f32 %v304_v7, %v304_v7  ;;  %v317_v14 = vmul.f32 %v305_v17, %v305_v17  ;;  %v308_v42 = vmul.f32 %v296_v11, %v296_v11  ;;  %v307_v24 = vmax.f32 %v303_v19, 0.0 }
  0xd6   : > { %896 = vmatpush1.bf16.msra.mxu1 %v895_v58  ;;  %v309_v21 = vmul.f32 %v297_v12, %v297_v12  ;;  %v298_v27 = vmax.f32 %v294_v16, 0.0  ;;  %v318_v28 = vmul.f32 %v306_v20, %v306_v20  ;;  %v299_v31 = vmax.f32 %v295_v23, 0.0 }
  0xd7   : > { %v320_v15 = vmul.f32 %v316_v18, %v304_v7  ;;  %v321_v22 = vmul.f32 %v317_v14, %v305_v17  ;;  %v312_v25 = vmul.f32 %v308_v42, %v296_v11  ;;  %v319_v60 = vmul.f32 %v307_v24, %v307_v24 }
  0xd8   : > { %v313_v29 = vmul.f32 %v309_v21, %v297_v12  ;;  %vm340_vm1 = vcmp.eq.f32.partialorder %v284_v62, -1.0  ;;  %v310_v36 = vmul.f32 %v298_v27, %v298_v27  ;;  %v322_v53 = vmul.f32 %v318_v28, %v306_v20 }
  0xd9   : > { %881 = vmatmul.mubr.msk.f32.vlgmr.msra.gmra.mrb[0].mxu1 %vm535_vm0, %v533_v51  ;;  %v324_v26 = vmul.f32 4.0, %v320_v15  ;;  %v325_v30 = vmul.f32 4.0, %v321_v22  ;;  %vm341_vm2 = vcmp.eq.f32.partialorder %v285_v63, -1.0  ;;  %v311_v44 = vmul.f32 %v299_v31, %v299_v31 }
  0xda   : > { %689 = vmatprep.mubr.f32.mxu1 %v1041_v3  ;;  %v323_v34 = vmul.f32 %v319_v60, %v307_v24  ;;  %vm336_vm3 = vcmp.eq.f32.partialorder %v284_v62, 0.0  ;;  %v344_v32 = vsel %vm340_vm1, -0.16666667, %v1041_v3  ;;  %vm337_vm4 = vcmp.eq.f32.partialorder %v285_v63, 0.0 }
  0xdb   : > { %v328_v35 = vsub.f32 %v312_v25, %v324_v26  ;;  %v329_v38 = vsub.f32 %v313_v29, %v325_v30  ;;  %v345_v13 = vsel %vm341_vm2, -0.16666667, %v1041_v3  ;;  %v314_v45 = vmul.f32 %v310_v36, %v298_v27 }
  0xdc   : > { %v326_v46 = vmul.f32 4.0, %v322_v53  ;;  %v348_v39 = vsel %vm336_vm3, 0.6666667, %v344_v32  ;;  %v315_v48 = vmul.f32 %v311_v44, %v299_v31  ;;  %v327_v49 = vmul.f32 4.0, %v323_v34 }
  0xdd   : > { %882 = vmatmul.mubr.msk.f32.gmra.mrb[2].mxu1 %vm535_vm0, %v534_v37  ;;  %v332_v40 = vmul.f32 0.16666667, %v328_v35  ;;  %v333_v47 = vmul.f32 0.16666667, %v329_v38  ;;  %v349_v50 = vsel %vm337_vm4, 0.6666667, %v345_v13 }
  0xde   : > { %vm342_vm5 = vcmp.eq.f32.partialorder %v1240_v1, -1.0  ;;  %v330_v52 = vsub.f32 %v314_v45, %v326_v46  ;;  %vm343_vm6 = vcmp.eq.f32.partialorder %v1243_v4, -1.0  ;;  %v331_v56 = vsub.f32 %v315_v48, %v327_v49 }
  0xdf   : > { %v352_v51 = vadd.f32 %v348_v39, %v332_v40  ;;  %v353_v55 = vadd.f32 %v349_v50, %v333_v47  ;;  %vm338_vm7 = vcmp.eq.f32.partialorder %v1240_v1, 0.0  ;;  %v346_v41 = vsel %vm342_vm5, -0.16666667, %v1041_v3 }
  0xe0   : > { %vm339_vm8 = vcmp.eq.f32.partialorder %v1243_v4, 0.0  ;;  %v347_v61 = vsel %vm343_vm6, -0.16666667, %v1041_v3  ;;  %v334_v63 = vmul.f32 0.16666667, %v330_v52 }
  0xe1   : > { %v350_v0 = vsel %vm338_vm7, 0.6666667, %v346_v41  ;;  %v335_v2 = vmul.f32 0.16666667, %v331_v56  ;;  %v351_v6 = vsel %vm339_vm8, 0.6666667, %v347_v61 }
  0xe2   : > { %v354_v11 = vadd.f32 %v350_v0, %v334_v63  ;;  %v1042_v45 = vmov 1983009808  }
  0xe3   : > { %v355_v4 = vadd.f32 %v351_v6, %v335_v2  ;;  %v764_v46 = vunpack.c.l.s4 %v1042_v45 }
 0x1a4   : > { %v608_v54 = vpop.f32.mrb[0].mxu0 }
 0x1a5   : > { %v696_v57 = vmul.f32 %v608_v54, %v352_v51  ;;  %v610_v37 = vpop.f32.mrb[1].mxu0 }
 0x1a6   : > { %v697_v58 = vmul.f32 %v610_v37, %v353_v55 }
 0x1a7   : > { %v700_v62 = vrot.slane %v696_v57, 4 }
 0x1a8   : > { %v706_v59 = vrot.slane %v697_v58, 4  ;;  %v614_v43 = vpop.f32.mrb[2].mxu0 }
 0x1a9   : > { %v701_v5 = vadd.f32 %v700_v62, %v696_v57  ;;  %v724_v7 = vmul.f32 %v614_v43, %v352_v51  ;;  %v616_v8 = vpop.f32.mrb[3].mxu0  ;;  %v765_v62 = vunpack.c.0.s8 %v764_v46 }
 0x1aa   : > { %v707_v10 = vadd.f32 %v706_v59, %v697_v58  ;;  %v725_v1 = vmul.f32 %v616_v8, %v353_v55 }
 0x1ab   : > { %v702_v17 = vrot.slane %v701_v5, 2  ;;  %v728_v18 = vrot.slane %v724_v7, 4  ;;  %v768_v6 = vsub.s32 %v765_v62, %v1155_v9 }
 0x1ac   : > { %v685_v33 = vpop.f32.mrb[0].mxu1  ;;  %v708_v12 = vrot.slane %v707_v10, 2  ;;  %v734_v14 = vrot.slane %v725_v1, 4 }
 0x1ad   : > { %v703_v3 = vadd.f32 %v702_v17, %v701_v5  ;;  %v698_v19 = vmul.f32 %v685_v33, %v354_v11  ;;  %v687_v42 = vpop.f32.mrb[1].mxu1  ;;  %v729_v15 = vadd.f32 %v728_v18, %v724_v7 }
 0x1ae   : > { %v709_v16 = vadd.f32 %v708_v12, %v707_v10  ;;  %v699_v20 = vmul.f32 %v687_v42, %v355_v4  ;;  %v735_v21 = vadd.f32 %v734_v14, %v725_v1 }
 0x1af   : > { %v712_v22 = vrot.slane %v698_v19, 4  ;;  %v730_v23 = vrot.slane %v729_v15, 2  ;;  %v704_v27 = vrot.slane %v703_v3, 1 }
 0x1b0   : > { %v718_v24 = vrot.slane %v699_v20, 4  ;;  %v691_v25 = vpop.f32.mrb[2].mxu1  ;;  %v736_v26 = vrot.slane %v735_v21, 2  ;;  %v710_v60 = vrot.slane %v709_v16, 1 }
 0x1b1   : > { %v713_v28 = vadd.f32 %v712_v22, %v698_v19  ;;  %v731_v29 = vadd.f32 %v730_v23, %v729_v15  ;;  %v726_v30 = vmul.f32 %v691_v25, %v354_v11  ;;  %v693_v31 = vpop.f32.mrb[3].mxu1  ;;  %v705_v39 = vadd.f32 %v704_v27, %v703_v3 }
 0x1b2   : > { %v719_v35 = vadd.f32 %v718_v24, %v699_v20  ;;  %v737_v36 = vadd.f32 %v736_v26, %v735_v21  ;;  %v727_v53 = vmul.f32 %v693_v31, %v355_v4  ;;  %v711_v50 = vadd.f32 %v710_v60, %v709_v16 }
 0x1b3   : > { %v714_v38 = vrot.slane %v713_v28, 2  ;;  %v732_v44 = vrot.slane %v731_v29, 1  ;;  %v740_v34 = vrot.slane %v726_v30, 4 }
 0x1b4   : > { %v720_v32 = vrot.slane %v719_v35, 2  ;;  %v738_v13 = vrot.slane %v737_v36, 1  ;;  %v746_v40 = vrot.slane %v727_v53, 4 }
 0x1b5   : > { %v715_v47 = vadd.f32 %v714_v38, %v713_v28  ;;  %v733_v48 = vadd.f32 %v732_v44, %v731_v29  ;;  %v741_v49 = vadd.f32 %v740_v34, %v726_v30 }
 0x1b6   : > { %v721_v51 = vadd.f32 %v720_v32, %v719_v35  ;;  %v739_v52 = vadd.f32 %v738_v13, %v737_v36  ;;  %v747_v54 = vadd.f32 %v746_v40, %v727_v53 }
 0x1b7   : > { %v742_v55 = vrot.slane %v741_v49, 2  ;;  %v753_v56 = vsel %vm752_vm9, %v705_v39, %v733_v48  ;;  %v716_v37 = vrot.slane %v715_v47, 1 }
 0x1b8   : > { %v748_v57 = vrot.slane %v747_v54, 2  ;;  %v754_v41 = vsel %vm752_vm9, %v711_v50, %v739_v52  ;;  %v722_v63 = vrot.slane %v721_v51, 1 }
 0x1b9   : > { %v743_v58 = vadd.f32 %v742_v55, %v741_v49  ;;  %v761_v61 = vcombine.low %v753_v56, %v754_v41  ;;  %v717_v43 = vadd.f32 %v716_v37, %v715_v47 }
 0x1ba   : > { %v749_v0 = vadd.f32 %v748_v57, %v747_v54  ;;  %v723_v7 = vadd.f32 %v722_v63, %v721_v51 }
 0x1bb   : > { %v744_v59 = vrot.slane %v743_v58, 1  ;;  %v769_v11 = vrot.slane %v761_v61, %v768_v6 }
 0x1bc   : > { %v750_v2 = vrot.slane %v749_v0, 1 }
 0x1bd   : > { %v745_v5 = vadd.f32 %v744_v59, %v743_v58 }
 0x1be   : > { %v751_v8 = vadd.f32 %v750_v2, %v749_v0 }
 0x1bf   : > { %v755_v10 = vsel %vm752_vm9, %v717_v43, %v745_v5 }
 0x1c0   : > { %v756_v1 = vsel %vm752_vm9, %v723_v7, %v751_v8 }
 0x1c1   : > { %v762_v17 = vcombine.low %v755_v10, %v756_v1 }
 0x1c3   : > { %v776_v18 = vrot.slane %v762_v17, %v768_v6 }
 0x1c5   : > { %v777_v33 = vcombine.low %v769_v11, %v776_v18 }
 0x1c7   : > { %779 = vst [vmem:[%s232_s17] sm:$0xff] %v777_v33 }
 0x1c8   : > { %984 = shalt.err (!%p981_p2)
}
 0x1c9   : > { %s985_s10 = scalar_lea.hbm %s1265_s30, 128  ;;  %s989_s13 = scalar_lea.hbm %s1312_s5, 256 }
 0x1ca   : > { %p986_p3 = scmp.ne.s32.totalorder %s1265_s30, %s985_s10  ;;  %p990_p8 = scmp.lt.u32.totalorder %s1265_s30, %s1312_s5 }
 0x1cb   : > { %p991_p9 = scmp.lt.u32.totalorder %s989_s13, %s985_s10  ;;  %p993_p11 = scmp.lt.u32.totalorder %s985_s10, %s1265_s30 }
 0x1cc   : > { %p987_p4 = pnand %p986_p3, %p1112_p5 }
 0x1cd   : > { %p992_p10 = por %p991_p9, %p990_p8 }
 0x1ce   : > { %p988_p7 = pneg %p987_p4 }
 0x1cf   : > { %p994_p12 = por %p993_p11, %p992_p10 }
 0x1d1   : > { %p995_p13 = pnand %p994_p12, %p988_p7 }
 0x1d3   : > { %998 = shalt.err (!%p995_p13)
}
 0x1d4   : > { %901 = dma.vmem_to_hbm [thread:$0]  (%p1112_p5), %s1267_s23, 128, %s1265_s30, %s781_s6  }
 0x1d5 PF: > { %p913_p0 = scmp.ge.s32.totalorder %s1037_s21, 2  ;;  %s807_s16 = sand.u32 1, %s1025_s18  }
 0x1d6   : > { %s808_s17 = scalar_lea.sflag [#allocation3], %s807_s16 }
 0x1d7   : > { %p908_p1 = pnand %p913_p0, %p1116_p6 }
 0x1d9   : > { %1020 = dma.done.wait (!%p908_p1), %s808_s17, 128  }
 0x1da   : > { %1022 = vsyncadd (!%p908_p1), %s808_s17, 4294967168  ;;  %p16_p2 = scmp.ge.s32.totalorder %s1099_s24, 4   ;;  %s1316_s18 = smov %s1029_s19 }
 0x1db   : > { %s1317_s19 = smov %s1033_s20  ;;  %s1318_s20 = smov %s1110_s27 }
 0x1dc   : > { %s1319_s21 = smov %s1099_s24  ;;  %18 = sbr.rel (!%p16_p2) target bundleno = 4 (0x4), region = 81 }
 0x1e3   :  { %813 = vsyncpa [#allocation3], 1 }
 0x1e4   :  { %815 = vsyncpa [#allocation3 + $0x1], 1 }
 0x1e5   :  { %816 = vsyncpa [#allocation4], 1 }
 0x1e6   :  { %818 = vsyncpa [#allocation4 + $0x1], 1 }

</bundles_post_ra>
